<compile_context>
chip_gen: v7x
topology: tpu7x:2x2x1
jax: 0.10.0
libtpu: 0.0.40
codegen_flags: <defaults>
</compile_context>

<pallas_src>
import jax
import jax.numpy as jnp
from jax.experimental import pallas as pl
from jax.experimental.pallas import tpu as pltpu


def _fused_attention_kernel(h_ref, enc_ref, v_enc_ref, v_h_ref, c_ref, ctx_ref):
    enc = enc_ref[...].astype(jnp.float32)          # (TB, S, H)
    h = h_ref[...].astype(jnp.float32)              # (TB, 1, H)
    v_enc = v_enc_ref[...]                          # (1, 1, H)  f32
    v_h = v_h_ref[...]                              # (1, 1, H)  f32
    c = c_ref[...]                                  # (1, 1, 1)  f32

    # Pre-softmax scores: enc . v_enc  (lane reduction over H).
    scores = jnp.sum(enc * v_enc, axis=-1, keepdims=True)          # (TB, S, 1)

    # Per-batch constant from h_t and the folded biases.
    h_score = jnp.sum(h * v_h, axis=-1, keepdims=True) + c         # (TB, 1, 1)
    scores = scores + h_score                                      # (TB, S, 1)

    # Softmax over the sequence axis (dim=1 in the torch code).
    m = jnp.max(scores, axis=1, keepdims=True)                     # (TB, 1, 1)
    p = jnp.exp(scores - m)                                        # (TB, S, 1)
    denom = jnp.sum(p, axis=1, keepdims=True)                      # (TB, 1, 1)
    attn = p * pl.reciprocal(denom, approx=False)                  # (TB, S, 1)

    # context[b] = sum_s attn[b, s] * enc[b, s]
    ctx_ref[...] = jnp.sum(attn * enc, axis=1, keepdims=True).astype(ctx_ref.dtype)


def fold_attention_params(params):
    """Fold linear1..linear4 + weight_linear into one effective projection.

    Mathematically exact (the chain is purely affine); only the floating-point
    rounding order changes.  Runs once in plain XLA, outside the kernel.
    """
    w1, b1, w2, b2, w3, b3, w4, b4, w5 = params
    H = w2.shape[0]
    f32 = jnp.float32

    u = w5.astype(f32).reshape(H, 1)                # == w5.T, (H, 1)
    c = jnp.zeros((), f32)
    for w, b in ((w4, b4), (w3, b3), (w2, b2)):
        c = c + jnp.dot(b.astype(f32), u)[0]
        u = jnp.dot(w.astype(f32).T, u)
    c = c + jnp.dot(b1.astype(f32), u)[0]
    v_full = jnp.dot(w1.astype(f32).T, u)           # (2H, 1)

    v_enc = v_full[:H].reshape(1, 1, H)
    v_h = v_full[H:].reshape(1, 1, H)
    c_bias = c.reshape(1, 1, 1)
    return v_enc, v_h, c_bias


def _choose_batch_tile(B, S, H, itemsize=4):
    """Largest batch tile that divides B and keeps the (double-buffered) enc
    block comfortably inside VMEM even on v7x (64 MiB physical)."""
    budget = 4 * 1024 * 1024                        # per-buffer enc budget
    per_row = max(1, S * H * itemsize)
    max_tb = max(1, budget // per_row)
    if B <= max_tb:
        return B                                    # whole batch in one grid step
    tb = max_tb
    while tb > 1 and B % tb != 0:
        tb -= 1
    return tb


def attention_forward(h_t, enc_outputs, params):
    """h_t: (B, H), enc_outputs: (B, S, H) -> context: (B, H)."""
    B, S, H = enc_outputs.shape
    v_enc, v_h, c_bias = fold_attention_params(params)

    TB = _choose_batch_tile(B, S, H)
    h_in = h_t.reshape(B, 1, H)                     # keep everything 3-D in-kernel

    ctx3 = pl.pallas_call(
        _fused_attention_kernel,
        out_shape=jax.ShapeDtypeStruct((B, 1, H), enc_outputs.dtype),
        grid_spec=pltpu.PrefetchScalarGridSpec(
            num_scalar_prefetch=0,
            grid=(B // TB,),
            in_specs=[
                pl.BlockSpec((TB, 1, H), lambda b: (b, 0, 0)),   # h_t
                pl.BlockSpec((TB, S, H), lambda b: (b, 0, 0)),   # enc_outputs
                pl.BlockSpec((1, 1, H), lambda b: (0, 0, 0)),    # v_enc (constant)
                pl.BlockSpec((1, 1, H), lambda b: (0, 0, 0)),    # v_h   (constant)
                pl.BlockSpec((1, 1, 1), lambda b: (0, 0, 0)),    # c_bias(constant)
            ],
            out_specs=pl.BlockSpec((TB, 1, H), lambda b: (b, 0, 0)),
        ),
        compiler_params=pltpu.CompilerParams(
            dimension_semantics=("parallel",)),
    )(h_in, enc_outputs, v_enc, v_h, c_bias)

    return ctx3.reshape(B, H)


def init_params(key, hidden_dim):
    """Deterministic init mimicking torch.nn.Linear default (U[-1/sqrt(fan_in), +])."""
    H = hidden_dim
    ks = jax.random.split(key, 9)

    def lin(kw, kb, out_f, in_f, bias=True):
        bound = 1.0 / jnp.sqrt(in_f)
        w = jax.random.uniform(kw, (out_f, in_f), jnp.float32, -bound, bound)
        b = (jax.random.uniform(kb, (out_f,), jnp.float32, -bound, bound)
             if bias else None)
        return w, b

    w1, b1 = lin(ks[0], ks[1], H, 2 * H)
    w2, b2 = lin(ks[2], ks[3], H, H)
    w3, b3 = lin(ks[4], ks[5], H, H)
    w4, b4 = lin(ks[6], ks[7], H, H)
    w5, _ = lin(ks[8], ks[8], 1, H, bias=False)
    return (w1, b1, w2, b2, w3, b3, w4, b4, w5)


def attention_reference(h_t, enc_outputs, params):
    """Pure-JAX reference matching the PyTorch forward exactly (un-fused)."""
    B, S, H = enc_outputs.shape
    w1, b1, w2, b2, w3, b3, w4, b4, w5 = params
    h_rep = jnp.broadcast_to(h_t[:, None, :], (B, S, H))
    cat = jnp.concatenate([enc_outputs, h_rep], axis=2).reshape(-1, 2 * H)
    x = cat @ w1.T + b1
    x = x @ w2.T + b2
    x = x @ w3.T + b3
    x = x @ w4.T + b4
    scores = (x @ w5.T).reshape(B, S)
    attn = jax.nn.softmax(scores, axis=1)
    return jnp.einsum("bs,bsh->bh", attn, enc_outputs)


if __name__ == "__main__":
    B, S, H = 2, 8, 32
    key = jax.random.PRNGKey(0)
    k_h, k_enc, k_p = jax.random.split(key, 3)

    h_t = jax.random.normal(k_h, (B, H), jnp.float32)
    enc_outputs = jax.random.normal(k_enc, (B, S, H), jnp.float32)
    params = init_params(k_p, H)

    ctx = attention_forward(h_t, enc_outputs, params)
    ctx = jax.block_until_ready(ctx)

    ref = attention_reference(h_t, enc_outputs, params)
    assert ctx.shape == (B, H)
    # Slightly looser tolerance: the algebraic fold of the affine chain changes
    # the floating-point rounding order (mathematically exact otherwise).
    assert jnp.allclose(ctx, ref, atol=1e-4, rtol=1e-4), "mismatch vs reference"

    print("KERNEL_OK")
</pallas_src>

<mosaic_0001>
module attributes {stable_mosaic.version = 11 : i64} {
  func.func @_fused_attention_kernel(%arg0: i32, %arg1: memref<2x1x32xf32, #tpu.memory_space<vmem>>, %arg2: memref<2x8x32xf32, #tpu.memory_space<vmem>>, %arg3: memref<1x1x32xf32, #tpu.memory_space<vmem>>, %arg4: memref<1x1x32xf32, #tpu.memory_space<vmem>>, %arg5: memref<1x1x1xf32, #tpu.memory_space<vmem>>, %arg6: memref<2x1x32xf32, #tpu.memory_space<vmem>>) attributes {dimension_semantics = [#tpu.dimension_semantics<parallel>], iteration_bounds = array<i64: 1>, scalar_prefetch = 0 : i64, scratch_operands = 0 : i64, tpu.core_type = #tpu.core_type<tc>, window_params = [{transform_indices = @transform_0, window_bounds = array<i64: 2, 1, 32>}, {transform_indices = @transform_1, window_bounds = array<i64: 2, 8, 32>}, {pipeline_mode = #tpu.pipeline_mode<synchronous>, transform_indices = @transform_2, window_bounds = array<i64: 1, 1, 32>}, {pipeline_mode = #tpu.pipeline_mode<synchronous>, transform_indices = @transform_3, window_bounds = array<i64: 1, 1, 32>}, {pipeline_mode = #tpu.pipeline_mode<synchronous>, transform_indices = @transform_4, window_bounds = array<i64: 1, 1, 1>}, {transform_indices = @transform_5, window_bounds = array<i64: 2, 1, 32>}]} {
    %c0 = arith.constant 0 : index
    %c0_0 = arith.constant 0 : index
    %c0_1 = arith.constant 0 : index
    %0 = vector.load %arg2[%c0, %c0_0, %c0_1] : memref<2x8x32xf32, #tpu.memory_space<vmem>>, vector<2x8x32xf32>
    %c0_2 = arith.constant 0 : index
    %c0_3 = arith.constant 0 : index
    %c0_4 = arith.constant 0 : index
    %1 = vector.load %arg1[%c0_2, %c0_3, %c0_4] : memref<2x1x32xf32, #tpu.memory_space<vmem>>, vector<2x1x32xf32>
    %c0_5 = arith.constant 0 : index
    %c0_6 = arith.constant 0 : index
    %c0_7 = arith.constant 0 : index
    %2 = vector.load %arg3[%c0_5, %c0_6, %c0_7] : memref<1x1x32xf32, #tpu.memory_space<vmem>>, vector<1x1x32xf32>
    %c0_8 = arith.constant 0 : index
    %c0_9 = arith.constant 0 : index
    %c0_10 = arith.constant 0 : index
    %3 = vector.load %arg4[%c0_8, %c0_9, %c0_10] : memref<1x1x32xf32, #tpu.memory_space<vmem>>, vector<1x1x32xf32>
    %c0_11 = arith.constant 0 : index
    %c0_12 = arith.constant 0 : index
    %c0_13 = arith.constant 0 : index
    %4 = vector.load %arg5[%c0_11, %c0_12, %c0_13] : memref<1x1x1xf32, #tpu.memory_space<vmem>>, vector<1x1x1xf32>
    %5 = vector.broadcast %2 : vector<1x1x32xf32> to vector<2x8x32xf32>
    %6 = arith.mulf %0, %5 : vector<2x8x32xf32>
    %cst = arith.constant dense<0.000000e+00> : vector<2x8xf32>
    %7 = vector.multi_reduction <add>, %6, %cst [2] : vector<2x8x32xf32> to vector<2x8xf32>
    %8 = vector.shape_cast %7 : vector<2x8xf32> to vector<2x8x1xf32>
    %9 = vector.broadcast %3 : vector<1x1x32xf32> to vector<2x1x32xf32>
    %10 = arith.mulf %1, %9 : vector<2x1x32xf32>
    %cst_14 = arith.constant dense<0.000000e+00> : vector<2x1xf32>
    %11 = vector.multi_reduction <add>, %10, %cst_14 [2] : vector<2x1x32xf32> to vector<2x1xf32>
    %12 = vector.shape_cast %11 : vector<2x1xf32> to vector<2x1x1xf32>
    %13 = vector.broadcast %4 : vector<1x1x1xf32> to vector<2x1x1xf32>
    %14 = arith.addf %12, %13 : vector<2x1x1xf32>
    %15 = vector.broadcast %14 : vector<2x1x1xf32> to vector<2x8x1xf32>
    %16 = arith.addf %8, %15 : vector<2x8x1xf32>
    %cst_15 = arith.constant dense<0xFF800000> : vector<2x1xf32>
    %17 = vector.multi_reduction <maximumf>, %16, %cst_15 [1] : vector<2x8x1xf32> to vector<2x1xf32>
    %18 = vector.shape_cast %17 : vector<2x1xf32> to vector<2x1x1xf32>
    %19 = vector.broadcast %18 : vector<2x1x1xf32> to vector<2x8x1xf32>
    %20 = arith.subf %16, %19 : vector<2x8x1xf32>
    %21 = math.exp %20 : vector<2x8x1xf32>
    %cst_16 = arith.constant dense<0.000000e+00> : vector<2x1xf32>
    %22 = vector.multi_reduction <add>, %21, %cst_16 [1] : vector<2x8x1xf32> to vector<2x1xf32>
    %23 = vector.shape_cast %22 : vector<2x1xf32> to vector<2x1x1xf32>
    %24 = tpu.reciprocal %23 : vector<2x1x1xf32> -> vector<2x1x1xf32>
    %25 = vector.broadcast %24 : vector<2x1x1xf32> to vector<2x8x1xf32>
    %26 = arith.mulf %21, %25 : vector<2x8x1xf32>
    %27 = vector.broadcast %26 : vector<2x8x1xf32> to vector<2x8x32xf32>
    %28 = arith.mulf %27, %0 : vector<2x8x32xf32>
    %cst_17 = arith.constant dense<0.000000e+00> : vector<2x32xf32>
    %29 = vector.multi_reduction <add>, %28, %cst_17 [1] : vector<2x8x32xf32> to vector<2x32xf32>
    %30 = vector.shape_cast %29 : vector<2x32xf32> to vector<2x1x32xf32>
    %c0_18 = arith.constant 0 : index
    %c0_19 = arith.constant 0 : index
    %c0_20 = arith.constant 0 : index
    %31 = vector.load %arg6[%c0_18, %c0_19, %c0_20] : memref<2x1x32xf32, #tpu.memory_space<vmem>>, vector<2x1x32xf32>
    tpu.vector_store %arg6[%c0_18, %c0_19, %c0_20], %30 {strides = array<i32>} : memref<2x1x32xf32, #tpu.memory_space<vmem>>, vector<2x1x32xf32>,
    return
  }
  func.func @transform_0(%arg0: i32) -> (i32, i32, i32) {
    %c0_i32 = arith.constant 0 : i32
    %c0_i32_0 = arith.constant 0 : i32
    %c0_i32_1 = arith.constant 0 : i32
    return %arg0, %c0_i32, %c0_i32_0 : i32, i32, i32
  }
  func.func @transform_1(%arg0: i32) -> (i32, i32, i32) {
    %c0_i32 = arith.constant 0 : i32
    %c0_i32_0 = arith.constant 0 : i32
    %c0_i32_1 = arith.constant 0 : i32
    return %arg0, %c0_i32, %c0_i32_0 : i32, i32, i32
  }
  func.func @transform_2(%arg0: i32) -> (i32, i32, i32) {
    %c0_i32 = arith.constant 0 : i32
    %c0_i32_0 = arith.constant 0 : i32
    %c0_i32_1 = arith.constant 0 : i32
    %c0_i32_2 = arith.constant 0 : i32
    return %c0_i32, %c0_i32_0, %c0_i32_1 : i32, i32, i32
  }
  func.func @transform_3(%arg0: i32) -> (i32, i32, i32) {
    %c0_i32 = arith.constant 0 : i32
    %c0_i32_0 = arith.constant 0 : i32
    %c0_i32_1 = arith.constant 0 : i32
    %c0_i32_2 = arith.constant 0 : i32
    return %c0_i32, %c0_i32_0, %c0_i32_1 : i32, i32, i32
  }
  func.func @transform_4(%arg0: i32) -> (i32, i32, i32) {
    %c0_i32 = arith.constant 0 : i32
    %c0_i32_0 = arith.constant 0 : i32
    %c0_i32_1 = arith.constant 0 : i32
    %c0_i32_2 = arith.constant 0 : i32
    return %c0_i32, %c0_i32_0, %c0_i32_1 : i32, i32, i32
  }
  func.func @transform_5(%arg0: i32) -> (i32, i32, i32) {
    %c0_i32 = arith.constant 0 : i32
    %c0_i32_0 = arith.constant 0 : i32
    %c0_i32_1 = arith.constant 0 : i32
    return %arg0, %c0_i32, %c0_i32_0 : i32, i32, i32
  }
}

</mosaic_0001>

<bundles_post_ra>
// kernel: tpu_custom_call.1
= control target key start
LH: loop header
LB: loop body
LE: loop exit
PB: predicated region body
PF: predicated region fallthrough
CT: control target
= control target key end

     0   :  { %s326_s0 = inlined_call_operand.vmem [shape: f32[2,1,32], index: 0, kind: input, shape index: {}]   ;;  %s327_s1 = inlined_call_operand.hbm [shape: f32[2,8,32], index: 1, kind: input, shape index: {}]   ;;  %s328_s2 = inlined_call_operand.vmem [shape: f32[1,1,32], index: 2, kind: input, shape index: {}]   ;;  %s329_s3 = inlined_call_operand.vmem [shape: f32[1,1,32], index: 3, kind: input, shape index: {}]   ;;  %s330_s4 = inlined_call_operand.<no memory space> [shape: f32[1,1,1], index: 4, kind: input, shape index: {}]   ;;  %s331_s5 = inlined_call_operand.hbm [shape: f32[2,1,32], index: 5, kind: output, shape index: {}]  }
   0x1   :  { %v10_v0 = vstv %s330_s4 }
   0x2   :  { %11 = vst [vmem:[#allocation2] sm:$0x1] %v10_v0 }
   0x3   :  { %12 = vsyncpa [#allocation4], 0 }
   0x4   :  { %13 = vsyncpa [#allocation5], 0  ;;  %s230_s20 = smov [#allocation3]   ;;  %s182_s24 = scalar_lea.hbm %s327_s1, 256 }
   0x5   :  { %s21_s21 = sshll.u32 %s230_s20, 4  ;;  %p183_p0 = scmp.ne.s32.totalorder %s327_s1, %s182_s24  ;;  %s22_s21 = int_to_ptr.vmem [resolvable:$true] %s21_s21 }
   0x6   :  { %p186_p1 = scmp.lt.u32.totalorder %s182_s24, %s327_s1 }
   0x8   :  { %p188_p2 = pnand %p186_p1, %p183_p0 }
   0xa   :  { %191 = shalt.err (!%p188_p2)
}
   0xb   :  { %s192_s4 = scalar_lea.vmem %s22_s21, 256  ;;  %p197_p4 = scmp.lt.s32.totalorder %s22_s21, %s22_s21 }
   0xc   :  { %p193_p3 = scmp.ne.s32.totalorder %s22_s21, %s192_s4  ;;  %p198_p5 = scmp.lt.s32.totalorder %s192_s4, %s192_s4 }
   0xe   :  { %p199_p6 = por %p198_p5, %p197_p4 }
  0x10   :  { %p200_p7 = pnand %p199_p6, %p193_p3 }
  0x12   :  { %203 = shalt.err (!%p200_p7)
}
  0x13   :  { %s231_s29 = smov 128   ;;  %s232_s30 = smov 8  }
  0x14   :  { %27 = dma.hbm_to_vmem [thread:$0]  %s327_s1, 256, %s22_s21, [#allocation4], %s231_s29, %s231_s29, %s232_s30  }
  0x15   :  { %226 = dma.done.wait [#allocation4], 256  }
  0x16   :  { %227 = vsyncadd [#allocation4], 4294967040  ;;  %vm61_vm0 = vcmask 253952   ;;  %v39_v1 = vld [vmem:[%s326_s0] sm:$0x1]  ;;  %v291_v6 = vld [vmem:[#allocation3] sm:$0xff]  ;;  %v70_v16 = vlaneseq }
  0x17   :  { %v42_v2 = vld [vmem:[%s329_s3] sm:$0x1]  ;;  %v40_v3 = vld [vmem:[%s326_s0 + $0x1] sm:$0x1]  ;;  %vm52_vm1 = vcmask 261120   ;;  %v296_v8 = vld [vmem:[#allocation3 + $0x8] sm:$0xff] }
  0x18   :  { %v59_v4 = vmul.f32 %v42_v2, %v39_v1  ;;  %v60_v5 = vmul.f32 %v42_v2, %v40_v3  ;;  %v164_v7 = vld [vmem:[%s328_s2] ss:$0 sm:$0xff]  ;;  %v233_v15 = vmov 0   ;;  %v71_v17 = vshrl.u32 %v70_v16, 7  ;;  %s234_s0 = smov [#allocation6]  }
  0x19   :  { %v50_v9 = vmul.f32 %v164_v7, %v291_v6  ;;  %v51_v10 = vmul.f32 %v164_v7, %v296_v8  ;;  %172 = vset.pattern.permute.xlu0 %v233_v15  ;;  %173 = vset.pattern.permute.xlu1 %v233_v15  ;;  %v43_v18 = vld [vmem:[#allocation2] sm:$0x1]  ;;  %vm80_vm2 = vcmask 7168   ;;  %s152_s2 = sshll.u32 %s234_s0, 4  ;;  %s153_s2 = int_to_ptr.vmem [resolvable:$true] %s152_s2 }
  0x1a   :  { %v62_v11 = vsel %vm61_vm0, %v59_v4, 0.0  ;;  %v65_v13 = vsel %vm61_vm0, %v60_v5, 0.0  ;;  %v72_v19 = vsub.s32 0, %v71_v17  ;;  %s204_s3 = scalar_lea.vmem %s153_s2, 32  ;;  %p209_p9 = scmp.lt.s32.totalorder %s153_s2, %s153_s2 }
  0x1b   :  { %63 = vadd.xlane.f32.xlu0 %v62_v11  ;;  %v53_v12 = vsel %vm52_vm1, %v50_v9, 0.0  ;;  %v56_v14 = vsel %vm52_vm1, %v51_v10, 0.0  ;;  %p205_p8 = scmp.ne.s32.totalorder %s153_s2, %s204_s3  ;;  %p210_p10 = scmp.lt.s32.totalorder %s204_s3, %s204_s3 }
  0x1c   :  { %54 = vadd.xlane.f32.xlu1 %v53_v12 }
  0x1d   :  { %p211_p11 = por %p210_p10, %p209_p9 }
  0x1f   :  { %66 = vadd.xlane.f32.xlu0 %v65_v13  ;;  %p212_p12 = pnand %p211_p11, %p205_p8 }
  0x20   :  { %57 = vadd.xlane.f32.xlu1 %v56_v14 }
  0xa8   :  { %v64_v20 = vpop.xlane.xlu0 %63 }
  0xa9   :  { %v68_v21 = vadd.f32 %v64_v20, %v43_v18  ;;  %v55_v22 = vpop.xlane.xlu1 %54 }
  0xab   :  { %v73_v23 = vrot.slane %v68_v21, %v72_v19 }
  0xac   :  { %v67_v24 = vpop.xlane.xlu0 %66 }
  0xad   :  { %v69_v25 = vadd.f32 %v67_v24, %v43_v18  ;;  %v78_v26 = vadd.f32 %v73_v23, %v55_v22  ;;  %v58_v27 = vpop.xlane.xlu1 %57 }
  0xaf   :  { %v81_v28 = vsel %vm80_vm2, %v78_v26, -inf  ;;  %v77_v29 = vrot.slane %v69_v25, %v72_v19 }
  0xb0   :  { %v82_v30 = vrot.slane %v81_v28, 4 }
  0xb1   :  { %v79_v31 = vadd.f32 %v77_v29, %v58_v27 }
  0xb2   :  { %v83_v32 = vmax.f32 %v81_v28, %v82_v30 }
  0xb3   :  { %v88_v33 = vsel %vm80_vm2, %v79_v31, -inf }
  0xb4   :  { %v84_v34 = vrot.slane %v83_v32, 2  ;;  %v89_v35 = vrot.slane %v88_v33, 4 }
  0xb6   :  { %v85_v36 = vmax.f32 %v83_v32, %v84_v34  ;;  %v90_v37 = vmax.f32 %v88_v33, %v89_v35 }
  0xb8   :  { %v86_v38 = vrot.slane %v85_v36, 1  ;;  %v91_v39 = vrot.slane %v90_v37, 2 }
  0xba   :  { %v87_v40 = vmax.f32 %v85_v36, %v86_v38  ;;  %v92_v41 = vmax.f32 %v90_v37, %v91_v39 }
  0xbc   :  { %v95_v42 = vsub.f32 %v78_v26, %v87_v40  ;;  %v93_v43 = vrot.slane %v92_v41, 1 }
  0xbe   :  { %v97_v44 = vmul.f32 1.442695, %v95_v42  ;;  %v94_v45 = vmax.f32 %v92_v41, %v93_v43 }
  0xc0   :  { %174 = vpow2.f32 %v97_v44  ;;  %v96_v46 = vsub.f32 %v79_v31, %v94_v45 }
  0xc2   :  { %v99_v47 = vmul.f32 1.442695, %v96_v46 }
  0xc4   :  { %176 = vpow2.f32 %v99_v47 }
  0xca   :  { %v175_v48 = vpop.eup %174 }
  0xcb   :  { %v101_v49 = vsel %vm80_vm2, %v175_v48, 0.0 }
  0xcc   :  { %v102_v50 = vrot.slane %v101_v49, 4 }
  0xce   :  { %v177_v51 = vpop.eup %176  ;;  %v103_v52 = vadd.f32 %v102_v50, %v101_v49 }
  0xcf   :  { %v108_v53 = vsel %vm80_vm2, %v177_v51, 0.0 }
  0xd0   :  { %v104_v54 = vrot.slane %v103_v52, 2  ;;  %v109_v55 = vrot.slane %v108_v53, 4 }
  0xd2   :  { %v105_v56 = vadd.f32 %v104_v54, %v103_v52  ;;  %v110_v57 = vadd.f32 %v109_v55, %v108_v53 }
  0xd4   :  { %v106_v58 = vrot.slane %v105_v56, 1  ;;  %v111_v59 = vrot.slane %v110_v57, 2 }
  0xd6   :  { %v107_v60 = vadd.f32 %v106_v58, %v105_v56  ;;  %v112_v61 = vadd.f32 %v111_v59, %v110_v57 }
  0xd8   :  { %178 = vrcp.f32 %v107_v60  ;;  %v113_v62 = vrot.slane %v112_v61, 1 }
  0xda   :  { %v114_v63 = vadd.f32 %v113_v62, %v112_v61 }
  0xdc   :  { %180 = vrcp.f32 %v114_v63 }
  0xe2   :  { %v179_v0 = vpop.eup %178 }
  0xe3   :  { %v117_v1 = vmul.f32 %v179_v0, %v175_v48 }
  0xe5   :  { %121 = vperm.xlu0 %172, %v117_v1  }
  0xe6   :  { %v181_v2 = vpop.eup %180 }
  0xe7   :  { %v118_v3 = vmul.f32 %v181_v2, %v177_v51 }
  0xe9   :  { %126 = vperm.xlu1 %173, %v118_v3  }
 0x164   :  { %v122_v4 = vpop.permute.xlu0 %121 }
 0x165   :  { %v129_v5 = vmul.f32 %v122_v4, %v291_v6 }
 0x167   :  { %v131_v7 = vsel %vm52_vm1, %v129_v5, 0.0 }
 0x168   :  { %v132_v9 = vrot.slane %v131_v7, 4  ;;  %v127_v10 = vpop.permute.xlu1 %126 }
 0x169   :  { %v130_v11 = vmul.f32 %v127_v10, %v296_v8 }
 0x16a   :  { %v133_v12 = vadd.f32 %v132_v9, %v131_v7 }
 0x16b   :  { %v138_v13 = vsel %vm52_vm1, %v130_v11, 0.0 }
 0x16c   :  { %v134_v14 = vrot.slane %v133_v12, 2  ;;  %v139_v15 = vrot.slane %v138_v13, 4 }
 0x16e   :  { %v135_v16 = vadd.f32 %v134_v14, %v133_v12  ;;  %v140_v17 = vadd.f32 %v139_v15, %v138_v13 }
 0x170   :  { %v136_v18 = vrot.slane %v135_v16, 1  ;;  %v141_v19 = vrot.slane %v140_v17, 2 }
 0x172   :  { %v137_v20 = vadd.f32 %v136_v18, %v135_v16  ;;  %v142_v21 = vadd.f32 %v141_v19, %v140_v17 }
 0x174   :  { %145 = vst.msk [vmem:[#allocation6] sm:$0x1] %vm61_vm0, %v137_v20  ;;  %v143_v6 = vrot.slane %v142_v21, 1 }
 0x176   :  { %v144_v22 = vadd.f32 %v143_v6, %v142_v21 }
 0x178   :  { %146 = vst.msk [vmem:[#allocation6 + $0x1] sm:$0x1] %vm61_vm0, %v144_v22 }
 0x179   :  { %215 = shalt.err (!%p212_p12)
}
 0x17a   :  { %s216_s17 = scalar_lea.hbm %s331_s5, 32 }
 0x17b   :  { %p217_p13 = scmp.ne.s32.totalorder %s331_s5, %s216_s17  ;;  %p220_p0 = scmp.lt.u32.totalorder %s216_s17, %s331_s5 }
 0x17d   :  { %p222_p1 = pnand %p220_p0, %p217_p13 }
 0x17f   :  { %225 = shalt.err (!%p222_p1)
}
 0x180   :  { %s235_s22 = smov 16   ;;  %s236_s23 = smov 1  }
 0x181   :  { %158 = dma.vmem_to_hbm [thread:$0]  %s153_s2, 32, %s331_s5, [#allocation5], %s235_s22, %s235_s22, %s236_s23  }
 0x182   :  { %228 = dma.done.wait [#allocation5], 32  }
 0x183   :  { %229 = vsyncadd [#allocation5], 4294967264 }
 0x184   :  { %162 = vsyncpa [#allocation4], 1 }
 0x185   :  { %163 = vsyncpa [#allocation5], 1 }

</bundles_post_ra>
